<compile_context>
chip_gen: v6e
topology: v6e:2x2x1
jax: 0.10.0
libtpu: 0.0.40
codegen_flags: <defaults>
</compile_context>

<pallas_src>
import jax
import jax.numpy as jnp
from jax.experimental import pallas as pl
from jax.experimental.pallas import tpu as pltpu


def mlp_kernel(x_ref, w1_ref, b1_ref, w2_ref, b2_ref, w3_ref, b3_ref, o_ref):
    # Hoisted bias casts: one f32 copy of each bias per batch tile.
    b1 = b1_ref[...].astype(jnp.float32)
    b2 = b2_ref[...].astype(jnp.float32)
    b3 = b3_ref[...].astype(jnp.float32)

    # Layer 1 + ReLU (f32 accumulation on the MXU).
    h1 = jnp.dot(x_ref[...], w1_ref[...], preferred_element_type=jnp.float32)
    h1 = jnp.maximum(h1 + b1, 0.0).astype(w2_ref.dtype)   # carry in compute dtype
    # Layer 2 + ReLU.
    h2 = jnp.dot(h1, w2_ref[...], preferred_element_type=jnp.float32)
    h2 = jnp.maximum(h2 + b2, 0.0).astype(w3_ref.dtype)
    # Layer 3 (logits, no activation).
    out = jnp.dot(h2, w3_ref[...], preferred_element_type=jnp.float32) + b3
    o_ref[...] = out.astype(o_ref.dtype)


def _round_up(n, m):
    return ((n + m - 1) // m) * m


def _pad2(a, rows, cols):
    return jnp.pad(a, ((0, rows - a.shape[0]), (0, cols - a.shape[1])))


def neural_net_forward(x, params, *, block_batch=1024, compute_dtype=None):
    """Pallas implementation of NeuralNet.forward.

    x: (B, input_size)
    params: dict with w1 (in,h), b1 (1,h), w2 (h,h), b2 (1,h), w3 (h,c), b3 (1,c)
    compute_dtype: matmul-operand dtype (bf16 recommended on v6e/v7x); the MXU
      accumulation is always f32 and the returned logits keep x.dtype.
    """
    w1, b1 = params["w1"], params["b1"]
    w2, b2 = params["w2"], params["b2"]
    w3, b3 = params["w3"], params["b3"]

    B, input_size = x.shape
    hidden_size = w1.shape[1]
    num_classes = w3.shape[1]

    out_dtype = x.dtype
    if compute_dtype is None:
        compute_dtype = x.dtype

    # Padding policy (zero padding is semantics-preserving: padded input columns
    # hit zero weight rows, padded hidden/logit columns have zero weights + zero
    # bias and ReLU(0)=0; extra logit columns are sliced off below):
    #   * input features: only to a sublane multiple (8).  x is the only
    #     per-tile streamed array, so 128-padding it would inflate HBM traffic.
    #   * hidden / class dims: to 128 so matmuls, ReLUs and the output store
    #     stay lane-dense (unmasked vst).
    in_p = _round_up(input_size, 8)
    h_p = _round_up(hidden_size, 128)
    c_p = _round_up(num_classes, 128)

    # Batch tile: multiple of 8 sublanes, capped at block_batch.  When the whole
    # (large) batch would fit a single tile, split it in two so a v7x megacore
    # can shard the "parallel" batch axis across both TensorCores.
    tb = min(block_batch, _round_up(B, 8))
    if _round_up(B, tb) == tb and tb >= 256:
        tb //= 2
    b_p = _round_up(B, tb)

    x_p = _pad2(x.astype(compute_dtype), b_p, in_p)
    w1_p = _pad2(w1.astype(compute_dtype), in_p, h_p)
    b1_p = _pad2(b1.astype(compute_dtype), 1, h_p)
    w2_p = _pad2(w2.astype(compute_dtype), h_p, h_p)
    b2_p = _pad2(b2.astype(compute_dtype), 1, h_p)
    w3_p = _pad2(w3.astype(compute_dtype), h_p, c_p)
    b3_p = _pad2(b3.astype(compute_dtype), 1, c_p)

    # Explicit VMEM budget: weights/biases once (single-buffered) + double-
    # buffered x/out tiles + headroom, instead of the scoped default.
    item = jnp.dtype(compute_dtype).itemsize
    weight_bytes = (in_p * h_p + h_p * h_p + h_p * c_p + 2 * h_p + c_p) * item
    stream_bytes = (2 * tb * in_p * item
                    + 2 * tb * c_p * jnp.dtype(out_dtype).itemsize)
    vmem_limit = int(1.5 * (weight_bytes + stream_bytes)) + (2 << 20)
    vmem_limit = max(4 << 20, min(vmem_limit, 100 << 20))

    def build(single_buffer_weights):
        # Weights/biases: full-array blocks with a constant index_map -> fetched
        # once and resident in VMEM across all batch tiles.  Buffered(1) drops
        # the pointless second pipeline buffer, halving their VMEM footprint.
        pm = pl.Buffered(1) if single_buffer_weights else None
        resident = lambda a: pl.BlockSpec(a.shape, lambda i: (0, 0),
                                          pipeline_mode=pm)
        return pl.pallas_call(
            mlp_kernel,
            out_shape=jax.ShapeDtypeStruct((b_p, c_p), out_dtype),
            grid=(b_p // tb,),
            in_specs=[
                pl.BlockSpec((tb, in_p), lambda i: (i, 0)),
                resident(w1_p), resident(b1_p),
                resident(w2_p), resident(b2_p),
                resident(w3_p), resident(b3_p),
            ],
            out_specs=pl.BlockSpec((tb, c_p), lambda i: (i, 0)),
            compiler_params=pltpu.CompilerParams(
                # Batch tiles are independent -> shard across v7x's 2 TCs.
                dimension_semantics=("parallel",),
                vmem_limit_bytes=vmem_limit,
            ),
        )

    args = (x_p, w1_p, b1_p, w2_p, b2_p, w3_p, b3_p)
    try:
        out_p = build(single_buffer_weights=True)(*args)
    except Exception:
        # Fallback for jax versions without single-buffer pipeline_mode support.
        out_p = build(single_buffer_weights=False)(*args)

    # Drop batch / class padding outside the kernel (keeps the store lane-dense).
    return out_p[:B, :num_classes]


def init_params(key, input_size, hidden_size, num_classes, dtype=jnp.float32):
    ks = jax.random.split(key, 6)

    def lin(kw, kb, fan_in, fan_out):
        bound = 1.0 / jnp.sqrt(fan_in)
        w = jax.random.uniform(kw, (fan_in, fan_out), jnp.float32, -bound, bound)
        b = jax.random.uniform(kb, (1, fan_out), jnp.float32, -bound, bound)
        return w.astype(dtype), b.astype(dtype)

    w1, b1 = lin(ks[0], ks[1], input_size, hidden_size)
    w2, b2 = lin(ks[2], ks[3], hidden_size, hidden_size)
    w3, b3 = lin(ks[4], ks[5], hidden_size, num_classes)
    return dict(w1=w1, b1=b1, w2=w2, b2=b2, w3=w3, b3=b3)


def reference_forward(x, p):
    h = jnp.maximum(x @ p["w1"] + p["b1"], 0.0)
    h = jnp.maximum(h @ p["w2"] + p["b2"], 0.0)
    return h @ p["w3"] + p["b3"]


if __name__ == "__main__":
    key = jax.random.PRNGKey(0)
    k_x, k_p = jax.random.split(key)

    # Small shapes matching the PyTorch module's intent.
    batch, input_size, hidden_size, num_classes = 8, 32, 32, 16
    x = jax.random.normal(k_x, (batch, input_size), jnp.float32)
    params = init_params(k_p, input_size, hidden_size, num_classes)

    # 1) f32 path, tiny batch: tight check against the pure-JAX reference.
    out = jax.block_until_ready(neural_net_forward(x, params))
    ref = reference_forward(x, params)
    assert out.shape == (batch, num_classes)
    assert jnp.allclose(out, ref, atol=1e-4, rtol=1e-4)

    # 2) bf16 compute path, large batch: exercises the multi-tile batch grid
    #    (2 grid steps of 512), single-buffered resident weights and the bf16
    #    MXU path.  Looser tolerance is a bf16 artifact, not a kernel bug.
    k_x2, _ = jax.random.split(k_x)
    big_batch = 1024
    x_big = jax.random.normal(k_x2, (big_batch, input_size), jnp.float32)
    out_big = jax.block_until_ready(
        neural_net_forward(x_big, params, compute_dtype=jnp.bfloat16))
    ref_big = reference_forward(x_big, params)
    assert out_big.shape == (big_batch, num_classes)
    assert jnp.allclose(out_big, ref_big, atol=1e-1, rtol=1e-1)

    print("KERNEL_OK")
</pallas_src>

<mosaic_0001>
module attributes {stable_mosaic.version = 11 : i64} {
  func.func @mlp_kernel(%arg0: i32, %arg1: memref<8x32xf32, #tpu.memory_space<vmem>>, %arg2: memref<32x128xf32, #tpu.memory_space<vmem>>, %arg3: memref<1x128xf32, #tpu.memory_space<vmem>>, %arg4: memref<128x128xf32, #tpu.memory_space<vmem>>, %arg5: memref<1x128xf32, #tpu.memory_space<vmem>>, %arg6: memref<128x128xf32, #tpu.memory_space<vmem>>, %arg7: memref<1x128xf32, #tpu.memory_space<vmem>>, %arg8: memref<8x128xf32, #tpu.memory_space<vmem>>) attributes {dimension_semantics = [#tpu.dimension_semantics<parallel>], iteration_bounds = array<i64: 1>, scalar_prefetch = 0 : i64, scratch_operands = 0 : i64, tpu.core_type = #tpu.core_type<tc>, window_params = [{transform_indices = @transform_0, window_bounds = array<i64: 8, 32>}, {pipeline_mode = #tpu.pipeline_mode<synchronous>, transform_indices = @transform_1, window_bounds = array<i64: 32, 128>}, {pipeline_mode = #tpu.pipeline_mode<synchronous>, transform_indices = @transform_2, window_bounds = array<i64: 1, 128>}, {pipeline_mode = #tpu.pipeline_mode<synchronous>, transform_indices = @transform_3, window_bounds = array<i64: 128, 128>}, {pipeline_mode = #tpu.pipeline_mode<synchronous>, transform_indices = @transform_4, window_bounds = array<i64: 1, 128>}, {pipeline_mode = #tpu.pipeline_mode<synchronous>, transform_indices = @transform_5, window_bounds = array<i64: 128, 128>}, {pipeline_mode = #tpu.pipeline_mode<synchronous>, transform_indices = @transform_6, window_bounds = array<i64: 1, 128>}, {transform_indices = @transform_7, window_bounds = array<i64: 8, 128>}]} {
    %c0 = arith.constant 0 : index
    %c0_0 = arith.constant 0 : index
    %0 = vector.load %arg3[%c0, %c0_0] : memref<1x128xf32, #tpu.memory_space<vmem>>, vector<1x128xf32>
    %c0_1 = arith.constant 0 : index
    %c0_2 = arith.constant 0 : index
    %1 = vector.load %arg5[%c0_1, %c0_2] : memref<1x128xf32, #tpu.memory_space<vmem>>, vector<1x128xf32>
    %c0_3 = arith.constant 0 : index
    %c0_4 = arith.constant 0 : index
    %2 = vector.load %arg7[%c0_3, %c0_4] : memref<1x128xf32, #tpu.memory_space<vmem>>, vector<1x128xf32>
    %c0_5 = arith.constant 0 : index
    %c0_6 = arith.constant 0 : index
    %3 = vector.load %arg1[%c0_5, %c0_6] : memref<8x32xf32, #tpu.memory_space<vmem>>, vector<8x32xf32>
    %c0_7 = arith.constant 0 : index
    %c0_8 = arith.constant 0 : index
    %4 = vector.load %arg2[%c0_7, %c0_8] : memref<32x128xf32, #tpu.memory_space<vmem>>, vector<32x128xf32>
    %cst = arith.constant dense<0.000000e+00> : vector<8x128xf32>
    %5 = tpu.matmul %3, %4, %cst {dimension_numbers = #tpu.dot_dimension_numbers<[1], [0], [0], [1], [0, 0, 1, 1], [], []>} : vector<8x32xf32>, vector<32x128xf32>, vector<8x128xf32> -> vector<8x128xf32>
    %6 = vector.broadcast %0 : vector<1x128xf32> to vector<8x128xf32>
    %7 = arith.addf %5, %6 : vector<8x128xf32>
    %cst_9 = arith.constant 0.000000e+00 : f32
    %8 = vector.broadcast %cst_9 : f32 to vector<8x128xf32>
    %9 = arith.maximumf %7, %8 : vector<8x128xf32>
    %c0_10 = arith.constant 0 : index
    %c0_11 = arith.constant 0 : index
    %10 = vector.load %arg4[%c0_10, %c0_11] : memref<128x128xf32, #tpu.memory_space<vmem>>, vector<128x128xf32>
    %cst_12 = arith.constant dense<0.000000e+00> : vector<8x128xf32>
    %11 = tpu.matmul %9, %10, %cst_12 {dimension_numbers = #tpu.dot_dimension_numbers<[1], [0], [0], [1], [0, 0, 1, 1], [], []>} : vector<8x128xf32>, vector<128x128xf32>, vector<8x128xf32> -> vector<8x128xf32>
    %12 = vector.broadcast %1 : vector<1x128xf32> to vector<8x128xf32>
    %13 = arith.addf %11, %12 : vector<8x128xf32>
    %cst_13 = arith.constant 0.000000e+00 : f32
    %14 = vector.broadcast %cst_13 : f32 to vector<8x128xf32>
    %15 = arith.maximumf %13, %14 : vector<8x128xf32>
    %c0_14 = arith.constant 0 : index
    %c0_15 = arith.constant 0 : index
    %16 = vector.load %arg6[%c0_14, %c0_15] : memref<128x128xf32, #tpu.memory_space<vmem>>, vector<128x128xf32>
    %cst_16 = arith.constant dense<0.000000e+00> : vector<8x128xf32>
    %17 = tpu.matmul %15, %16, %cst_16 {dimension_numbers = #tpu.dot_dimension_numbers<[1], [0], [0], [1], [0, 0, 1, 1], [], []>} : vector<8x128xf32>, vector<128x128xf32>, vector<8x128xf32> -> vector<8x128xf32>
    %18 = vector.broadcast %2 : vector<1x128xf32> to vector<8x128xf32>
    %19 = arith.addf %17, %18 : vector<8x128xf32>
    %c0_17 = arith.constant 0 : index
    %c0_18 = arith.constant 0 : index
    %20 = vector.load %arg8[%c0_17, %c0_18] : memref<8x128xf32, #tpu.memory_space<vmem>>, vector<8x128xf32>
    tpu.vector_store %arg8[%c0_17, %c0_18], %19 {strides = array<i32>} : memref<8x128xf32, #tpu.memory_space<vmem>>, vector<8x128xf32>,
    return
  }
  func.func @transform_0(%arg0: i32) -> (i32, i32) {
    %c0_i32 = arith.constant 0 : i32
    %c0_i32_0 = arith.constant 0 : i32
    return %arg0, %c0_i32 : i32, i32
  }
  func.func @transform_1(%arg0: i32) -> (i32, i32) {
    %c0_i32 = arith.constant 0 : i32
    %c0_i32_0 = arith.constant 0 : i32
    %c0_i32_1 = arith.constant 0 : i32
    return %c0_i32, %c0_i32_0 : i32, i32
  }
  func.func @transform_2(%arg0: i32) -> (i32, i32) {
    %c0_i32 = arith.constant 0 : i32
    %c0_i32_0 = arith.constant 0 : i32
    %c0_i32_1 = arith.constant 0 : i32
    return %c0_i32, %c0_i32_0 : i32, i32
  }
  func.func @transform_3(%arg0: i32) -> (i32, i32) {
    %c0_i32 = arith.constant 0 : i32
    %c0_i32_0 = arith.constant 0 : i32
    %c0_i32_1 = arith.constant 0 : i32
    return %c0_i32, %c0_i32_0 : i32, i32
  }
  func.func @transform_4(%arg0: i32) -> (i32, i32) {
    %c0_i32 = arith.constant 0 : i32
    %c0_i32_0 = arith.constant 0 : i32
    %c0_i32_1 = arith.constant 0 : i32
    return %c0_i32, %c0_i32_0 : i32, i32
  }
  func.func @transform_5(%arg0: i32) -> (i32, i32) {
    %c0_i32 = arith.constant 0 : i32
    %c0_i32_0 = arith.constant 0 : i32
    %c0_i32_1 = arith.constant 0 : i32
    return %c0_i32, %c0_i32_0 : i32, i32
  }
  func.func @transform_6(%arg0: i32) -> (i32, i32) {
    %c0_i32 = arith.constant 0 : i32
    %c0_i32_0 = arith.constant 0 : i32
    %c0_i32_1 = arith.constant 0 : i32
    return %c0_i32, %c0_i32_0 : i32, i32
  }
  func.func @transform_7(%arg0: i32) -> (i32, i32) {
    %c0_i32 = arith.constant 0 : i32
    %c0_i32_0 = arith.constant 0 : i32
    return %arg0, %c0_i32 : i32, i32
  }
}

module attributes {stable_mosaic.version = 11 : i64} {
  func.func @mlp_kernel(%arg0: i32, %arg1: memref<8x32xf32, #tpu.memory_space<vmem>>, %arg2: memref<32x128xf32, #tpu.memory_space<vmem>>, %arg3: memref<1x128xf32, #tpu.memory_space<vmem>>, %arg4: memref<128x128xf32, #tpu.memory_space<vmem>>, %arg5: memref<1x128xf32, #tpu.memory_space<vmem>>, %arg6: memref<128x128xf32, #tpu.memory_space<vmem>>, %arg7: memref<1x128xf32, #tpu.memory_space<vmem>>, %arg8: memref<8x128xf32, #tpu.memory_space<vmem>>) attributes {dimension_semantics = [#tpu.dimension_semantics<parallel>], iteration_bounds = array<i64: 1>, scalar_prefetch = 0 : i64, scratch_operands = 0 : i64, tpu.core_type = #tpu.core_type<tc>, window_params = [{transform_indices = @transform_0, window_bounds = array<i64: 8, 32>}, {pipeline_mode = #tpu.pipeline_mode<synchronous>, transform_indices = @transform_1, window_bounds = array<i64: 32, 128>}, {pipeline_mode = #tpu.pipeline_mode<synchronous>, transform_indices = @transform_2, window_bounds = array<i64: 1, 128>}, {pipeline_mode = #tpu.pipeline_mode<synchronous>, transform_indices = @transform_3, window_bounds = array<i64: 128, 128>}, {pipeline_mode = #tpu.pipeline_mode<synchronous>, transform_indices = @transform_4, window_bounds = array<i64: 1, 128>}, {pipeline_mode = #tpu.pipeline_mode<synchronous>, transform_indices = @transform_5, window_bounds = array<i64: 128, 128>}, {pipeline_mode = #tpu.pipeline_mode<synchronous>, transform_indices = @transform_6, window_bounds = array<i64: 1, 128>}, {transform_indices = @transform_7, window_bounds = array<i64: 8, 128>}]} {
    %c0 = arith.constant 0 : index
    %c0_0 = arith.constant 0 : index
    %0 = vector.load %arg3[%c0, %c0_0] : memref<1x128xf32, #tpu.memory_space<vmem>>, vector<1x128xf32>
    %c0_1 = arith.constant 0 : index
    %c0_2 = arith.constant 0 : index
    %1 = vector.load %arg5[%c0_1, %c0_2] : memref<1x128xf32, #tpu.memory_space<vmem>>, vector<1x128xf32>
    %c0_3 = arith.constant 0 : index
    %c0_4 = arith.constant 0 : index
    %2 = vector.load %arg7[%c0_3, %c0_4] : memref<1x128xf32, #tpu.memory_space<vmem>>, vector<1x128xf32>
    %c0_5 = arith.constant 0 : index
    %c0_6 = arith.constant 0 : index
    %3 = vector.load %arg1[%c0_5, %c0_6] : memref<8x32xf32, #tpu.memory_space<vmem>>, vector<8x32xf32>
    %c0_7 = arith.constant 0 : index
    %c0_8 = arith.constant 0 : index
    %4 = vector.load %arg2[%c0_7, %c0_8] : memref<32x128xf32, #tpu.memory_space<vmem>>, vector<32x128xf32>
    %cst = arith.constant dense<0.000000e+00> : vector<8x128xf32>
    %5 = tpu.matmul %3, %4, %cst {dimension_numbers = #tpu.dot_dimension_numbers<[1], [0], [0], [1], [0, 0, 1, 1], [], []>} : vector<8x32xf32>, vector<32x128xf32>, vector<8x128xf32> -> vector<8x128xf32>
    %6 = vector.broadcast %0 : vector<1x128xf32> to vector<8x128xf32>
    %7 = arith.addf %5, %6 : vector<8x128xf32>
    %cst_9 = arith.constant 0.000000e+00 : f32
    %8 = vector.broadcast %cst_9 : f32 to vector<8x128xf32>
    %9 = arith.maximumf %7, %8 : vector<8x128xf32>
    %c0_10 = arith.constant 0 : index
    %c0_11 = arith.constant 0 : index
    %10 = vector.load %arg4[%c0_10, %c0_11] : memref<128x128xf32, #tpu.memory_space<vmem>>, vector<128x128xf32>
    %cst_12 = arith.constant dense<0.000000e+00> : vector<8x128xf32>
    %11 = tpu.matmul %9, %10, %cst_12 {dimension_numbers = #tpu.dot_dimension_numbers<[1], [0], [0], [1], [0, 0, 1, 1], [], []>} : vector<8x128xf32>, vector<128x128xf32>, vector<8x128xf32> -> vector<8x128xf32>
    %12 = vector.broadcast %1 : vector<1x128xf32> to vector<8x128xf32>
    %13 = arith.addf %11, %12 : vector<8x128xf32>
    %cst_13 = arith.constant 0.000000e+00 : f32
    %14 = vector.broadcast %cst_13 : f32 to vector<8x128xf32>
    %15 = arith.maximumf %13, %14 : vector<8x128xf32>
    %c0_14 = arith.constant 0 : index
    %c0_15 = arith.constant 0 : index
    %16 = vector.load %arg6[%c0_14, %c0_15] : memref<128x128xf32, #tpu.memory_space<vmem>>, vector<128x128xf32>
    %cst_16 = arith.constant dense<0.000000e+00> : vector<8x128xf32>
    %17 = tpu.matmul %15, %16, %cst_16 {dimension_numbers = #tpu.dot_dimension_numbers<[1], [0], [0], [1], [0, 0, 1, 1], [], []>} : vector<8x128xf32>, vector<128x128xf32>, vector<8x128xf32> -> vector<8x128xf32>
    %18 = vector.broadcast %2 : vector<1x128xf32> to vector<8x128xf32>
    %19 = arith.addf %17, %18 : vector<8x128xf32>
    %c0_17 = arith.constant 0 : index
    %c0_18 = arith.constant 0 : index
    %20 = vector.load %arg8[%c0_17, %c0_18] : memref<8x128xf32, #tpu.memory_space<vmem>>, vector<8x128xf32>
    tpu.vector_store %arg8[%c0_17, %c0_18], %19 {strides = array<i32>} : memref<8x128xf32, #tpu.memory_space<vmem>>, vector<8x128xf32>,
    return
  }
  func.func @transform_0(%arg0: i32) -> (i32, i32) {
    %c0_i32 = arith.constant 0 : i32
    %c0_i32_0 = arith.constant 0 : i32
    return %arg0, %c0_i32 : i32, i32
  }
  func.func @transform_1(%arg0: i32) -> (i32, i32) {
    %c0_i32 = arith.constant 0 : i32
    %c0_i32_0 = arith.constant 0 : i32
    %c0_i32_1 = arith.constant 0 : i32
    return %c0_i32, %c0_i32_0 : i32, i32
  }
  func.func @transform_2(%arg0: i32) -> (i32, i32) {
    %c0_i32 = arith.constant 0 : i32
    %c0_i32_0 = arith.constant 0 : i32
    %c0_i32_1 = arith.constant 0 : i32
    return %c0_i32, %c0_i32_0 : i32, i32
  }
  func.func @transform_3(%arg0: i32) -> (i32, i32) {
    %c0_i32 = arith.constant 0 : i32
    %c0_i32_0 = arith.constant 0 : i32
    %c0_i32_1 = arith.constant 0 : i32
    return %c0_i32, %c0_i32_0 : i32, i32
  }
  func.func @transform_4(%arg0: i32) -> (i32, i32) {
    %c0_i32 = arith.constant 0 : i32
    %c0_i32_0 = arith.constant 0 : i32
    %c0_i32_1 = arith.constant 0 : i32
    return %c0_i32, %c0_i32_0 : i32, i32
  }
  func.func @transform_5(%arg0: i32) -> (i32, i32) {
    %c0_i32 = arith.constant 0 : i32
    %c0_i32_0 = arith.constant 0 : i32
    %c0_i32_1 = arith.constant 0 : i32
    return %c0_i32, %c0_i32_0 : i32, i32
  }
  func.func @transform_6(%arg0: i32) -> (i32, i32) {
    %c0_i32 = arith.constant 0 : i32
    %c0_i32_0 = arith.constant 0 : i32
    %c0_i32_1 = arith.constant 0 : i32
    return %c0_i32, %c0_i32_0 : i32, i32
  }
  func.func @transform_7(%arg0: i32) -> (i32, i32) {
    %c0_i32 = arith.constant 0 : i32
    %c0_i32_0 = arith.constant 0 : i32
    return %arg0, %c0_i32 : i32, i32
  }
}

</mosaic_0001>

<bundles_post_ra>
// kernel: tpu_custom_call.1
= control target key start
LH: loop header
LB: loop body
LE: loop exit
PB: predicated region body
PF: predicated region fallthrough
CT: control target
= control target key end

     0   :  { %12 = vsyncpa [#allocation3], 0  ;;  %s737_s0 = inlined_call_operand.hbm [shape: f32[8,32], index: 0, kind: input, shape index: {}]   ;;  %s738_s1 = inlined_call_operand.hbm [shape: f32[32,128], index: 1, kind: input, shape index: {}]   ;;  %s739_s2 = inlined_call_operand.vmem [shape: f32[1,128], index: 2, kind: input, shape index: {}]   ;;  %s740_s3 = inlined_call_operand.hbm [shape: f32[128,128], index: 3, kind: input, shape index: {}]   ;;  %s741_s4 = inlined_call_operand.vmem [shape: f32[1,128], index: 4, kind: input, shape index: {}]   ;;  %s742_s5 = inlined_call_operand.hbm [shape: f32[128,128], index: 5, kind: input, shape index: {}]   ;;  %s743_s6 = inlined_call_operand.vmem [shape: f32[1,128], index: 6, kind: input, shape index: {}]   ;;  %s744_s7 = inlined_call_operand.hbm [shape: f32[8,128], index: 7, kind: output, shape index: {}]  }
   0x1   :  { %13 = vsyncpa [#allocation6], 0 }
   0x2   :  { %14 = vsyncpa [#allocation9], 0 }
   0x3   :  { %15 = vsyncpa [#allocation4], 0  ;;  %s613_s24 = smov [#allocation5]  }
   0x4   :  { %s31_s25 = sshll.u32 %s613_s24, 4  ;;  %s32_s25 = int_to_ptr.vmem [resolvable:$true] %s31_s25 }
   0x5   :  { %s513_s26 = scalar_lea.vmem %s32_s25, 512  ;;  %p518_p1 = scmp.lt.s32.totalorder %s32_s25, %s32_s25 }
   0x6   :  { %p514_p0 = scmp.ne.s32.totalorder %s32_s25, %s513_s26  ;;  %p519_p2 = scmp.lt.s32.totalorder %s513_s26, %s513_s26 }
   0x8   :  { %p520_p3 = por %p519_p2, %p518_p1 }
   0xa   :  { %p521_p4 = pnand %p520_p3, %p514_p0 }
   0xc   :  { %524 = shalt.err (!%p521_p4)
}
   0xd   :  { %s614_s27 = smov 128   ;;  %s615_s28 = smov 8  }
   0xe   :  { %37 = dma.hbm_to_vmem [thread:$0]  %s738_s1, 512, %s32_s25, [#allocation6], %s614_s27, %s614_s27, %s615_s28  }
   0xf   :  { %s616_s8 = smov [#allocation2]   ;;  %s617_s10 = smov [#allocation7]  }
  0x10   :  { %s22_s9 = sshll.u32 %s616_s8, 4  ;;  %s45_s11 = sshll.u32 %s617_s10, 4  ;;  %s23_s9 = int_to_ptr.vmem [resolvable:$true] %s22_s9  ;;  %s46_s11 = int_to_ptr.vmem [resolvable:$true] %s45_s11 }
  0x11   :  { %s533_s12 = scalar_lea.vmem %s23_s9, 128  ;;  %p538_p6 = scmp.lt.s32.totalorder %s23_s9, %s23_s9 }
  0x12   :  { %p534_p5 = scmp.ne.s32.totalorder %s23_s9, %s533_s12  ;;  %p539_p7 = scmp.lt.s32.totalorder %s533_s12, %s533_s12 }
  0x14   :  { %p540_p8 = por %p539_p7, %p538_p6 }
  0x16   :  { %p541_p9 = pnand %p540_p8, %p534_p5 }
  0x18   :  { %544 = shalt.err (!%p541_p9)
}
  0x19   :  { %25 = dma.hbm_to_vmem [thread:$0]  %s737_s0, 128, %s23_s9, [#allocation3]  }
  0x1a   :  { %s553_s15 = scalar_lea.vmem %s46_s11, 2048  ;;  %p558_p11 = scmp.lt.s32.totalorder %s46_s11, %s46_s11 }
  0x1b   :  { %p554_p10 = scmp.ne.s32.totalorder %s46_s11, %s553_s15  ;;  %p559_p12 = scmp.lt.s32.totalorder %s553_s15, %s553_s15 }
  0x1d   :  { %p560_p13 = por %p559_p12, %p558_p11 }
  0x1f   :  { %p561_p0 = pnand %p560_p13, %p554_p10 }
  0x21   :  { %564 = shalt.err (!%p561_p0)
}
  0x22   :  { %51 = dma.hbm_to_vmem [thread:$0]  %s740_s3, 2048, %s46_s11, [#allocation6], %s614_s27, %s614_s27, %s615_s28  }
  0x23   :  { %s618_s17 = smov [#allocation8]  }
  0x24   :  { %s59_s18 = sshll.u32 %s618_s17, 4  ;;  %s60_s18 = int_to_ptr.vmem [resolvable:$true] %s59_s18 }
  0x25   :  { %s573_s19 = scalar_lea.vmem %s60_s18, 2048  ;;  %p578_p2 = scmp.lt.s32.totalorder %s60_s18, %s60_s18 }
  0x26   :  { %p574_p1 = scmp.ne.s32.totalorder %s60_s18, %s573_s19  ;;  %p579_p3 = scmp.lt.s32.totalorder %s573_s19, %s573_s19 }
  0x28   :  { %p580_p4 = por %p579_p3, %p578_p2 }
  0x2a   :  { %p581_p5 = pnand %p580_p4, %p574_p1 }
  0x2c   :  { %584 = shalt.err (!%p581_p5)
}
  0x2d   :  { %65 = dma.hbm_to_vmem [thread:$0]  %s742_s5, 2048, %s60_s18, [#allocation9], %s614_s27, %s614_s27, %s615_s28  }
  0x2e   :  { %605 = dma.done.wait [#allocation3], 128  }
  0x2f   :  { %606 = vsyncadd [#allocation3], 4294967168 }
  0x30   :  { %607 = dma.done.wait [#allocation6], 2560  }
  0x31   :  { %608 = vsyncadd [#allocation6], 4294964736 }
  0x32   :  { %609 = dma.done.wait [#allocation9], 2048  }
  0x33   :  { %610 = vsyncadd [#allocation9], 4294965248  ;;  %v619_v0 = vmov 0.0   ;;  %vm620_vm0 = vmmov 0   ;;  %v87_v1 = vld [vmem:[#allocation5 + $0x18] sm:$0xff]  ;;  %v86_v2 = vld [vmem:[#allocation5 + $0x10] sm:$0xff] }
  0x34   :  { %415 = vmatprep.subr.mxu0 %v619_v0  ;;  %423 = vmatprep.mubr.msk.f32.mxu0 %vm620_vm0, %v619_v0  ;;  %v184_v3 = vld [vmem:[#allocation7 + $0x78] sm:$0xff]  ;;  %v85_v4 = vld [vmem:[#allocation5 + $0x8] sm:$0xff]  ;;  %v183_v5 = vld [vmem:[#allocation7 + $0x70] sm:$0xff]  ;;  %vm94_vm1 = vcmask 261120   ;;  %s621_s24 = smov [#allocation10]  }
  0x35   :  { %426 = vmatprep.subr.mxu1 %v619_v0  ;;  %458 = vmatprep.mubr.msk.f32.mxu1 %vm620_vm0, %v619_v0  ;;  %v182_v6 = vld [vmem:[#allocation7 + $0x68] sm:$0xff]  ;;  %v84_v7 = vld [vmem:[#allocation5] sm:$0xff]  ;;  %v83_v8 = vld [vmem:[#allocation2] sm:$0xff]  ;;  %s361_s25 = sshll.u32 %s621_s24, 4  ;;  %s362_s25 = int_to_ptr.vmem [resolvable:$true] %s361_s25 }
  0x36   :  { %416 = vmatpush3.msra.mxu0 %v87_v1  ;;  %427 = vmatpush3.msra.mxu1 %v184_v3  ;;  %v181_v9 = vld [vmem:[#allocation7 + $0x60] sm:$0xff]  ;;  %v180_v10 = vld [vmem:[#allocation7 + $0x58] sm:$0xff]  ;;  %v179_v11 = vld [vmem:[#allocation7 + $0x50] sm:$0xff]  ;;  %s585_s26 = scalar_lea.vmem %s362_s25, 128  ;;  %p590_p7 = scmp.lt.s32.totalorder %s362_s25, %s362_s25 }
  0x37   :  { %417 = vmatprep.subr.mxu0 %v619_v0  ;;  %428 = vmatprep.subr.mxu1 %v619_v0  ;;  %v178_v12 = vld [vmem:[#allocation7 + $0x48] sm:$0xff]  ;;  %v177_v13 = vld [vmem:[#allocation7 + $0x40] sm:$0xff]  ;;  %v176_v14 = vld [vmem:[#allocation7 + $0x38] sm:$0xff]  ;;  %p586_p6 = scmp.ne.s32.totalorder %s362_s25, %s585_s26  ;;  %p591_p8 = scmp.lt.s32.totalorder %s585_s26, %s585_s26 }
  0x38   :  { %418 = vmatpush3.msra.mxu0 %v86_v2  ;;  %429 = vmatpush3.msra.mxu1 %v183_v5  ;;  %v175_v15 = vld [vmem:[#allocation7 + $0x30] sm:$0xff]  ;;  %v174_v16 = vld [vmem:[#allocation7 + $0x28] sm:$0xff]  ;;  %v173_v17 = vld [vmem:[#allocation7 + $0x20] sm:$0xff] }
  0x39   :  { %419 = vmatprep.subr.mxu0 %v619_v0  ;;  %430 = vmatprep.subr.mxu1 %v619_v0  ;;  %v172_v18 = vld [vmem:[#allocation7 + $0x18] sm:$0xff]  ;;  %v171_v19 = vld [vmem:[#allocation7 + $0x10] sm:$0xff]  ;;  %v170_v20 = vld [vmem:[#allocation7 + $0x8] sm:$0xff]  ;;  %p592_p9 = por %p591_p8, %p590_p7 }
  0x3a   :  { %420 = vmatpush3.msra.mxu0 %v85_v4  ;;  %431 = vmatpush3.msra.mxu1 %v182_v6  ;;  %v169_v21 = vld [vmem:[#allocation7] sm:$0xff]  ;;  %v277_v22 = vld [vmem:[#allocation8 + $0x78] sm:$0xff]  ;;  %v276_v23 = vld [vmem:[#allocation8 + $0x70] sm:$0xff] }
  0x3b   :  { %421 = vmatprep.subr.mxu0 %v619_v0  ;;  %432 = vmatprep.subr.mxu1 %v619_v0  ;;  %v275_v24 = vld [vmem:[#allocation8 + $0x68] sm:$0xff]  ;;  %v274_v25 = vld [vmem:[#allocation8 + $0x60] sm:$0xff]  ;;  %v273_v26 = vld [vmem:[#allocation8 + $0x58] sm:$0xff]  ;;  %p593_p10 = pnand %p592_p9, %p586_p6 }
  0x3c   :  { %422 = vmatpush3.msra.mxu0 %v84_v7  ;;  %433 = vmatpush3.msra.mxu1 %v181_v9  ;;  %v272_v27 = vld [vmem:[#allocation8 + $0x50] sm:$0xff]  ;;  %v271_v28 = vld [vmem:[#allocation8 + $0x48] sm:$0xff]  ;;  %v270_v29 = vld [vmem:[#allocation8 + $0x40] sm:$0xff] }
  0x3d   :  { %424 = vmatmul.mubr.msk.f32.vlgmr.msra.gmra.mxu0 %vm94_vm1, %v83_v8  ;;  %434 = vmatprep.subr.mxu1 %v619_v0  ;;  %v269_v30 = vld [vmem:[#allocation8 + $0x38] sm:$0xff]  ;;  %v268_v31 = vld [vmem:[#allocation8 + $0x30] sm:$0xff]  ;;  %v267_v32 = vld [vmem:[#allocation8 + $0x28] sm:$0xff] }
  0x3e   :  { %461 = vmatprep.subr.mxu0 %v619_v0  ;;  %435 = vmatpush3.msra.mxu1 %v180_v10  ;;  %v266_v33 = vld [vmem:[#allocation8 + $0x20] sm:$0xff]  ;;  %v265_v34 = vld [vmem:[#allocation8 + $0x18] sm:$0xff]  ;;  %v264_v40 = vld [vmem:[#allocation8 + $0x10] sm:$0xff] }
  0x3f   :  { %493 = vmatprep.mubr.msk.f32.mxu0 %vm620_vm0, %v619_v0  ;;  %436 = vmatprep.subr.mxu1 %v619_v0  ;;  %v372_v35 = vld [vmem:[%s739_s2] ss:$0 sm:$0xff]  ;;  %v263_v41 = vld [vmem:[#allocation8 + $0x8] sm:$0xff]  ;;  %v262_v42 = vld [vmem:[#allocation8] sm:$0xff] }
  0x40   :  { %437 = vmatpush3.msra.mxu1 %v179_v11  ;;  %462 = vmatpush3.msra.mxu0 %v277_v22  ;;  %v374_v43 = vld [vmem:[%s741_s4] ss:$0 sm:$0xff] }
  0x41   :  { %438 = vmatprep.subr.mxu1 %v619_v0  ;;  %463 = vmatprep.subr.mxu0 %v619_v0  ;;  %v375_v48 = vld [vmem:[%s743_s6] ss:$0 sm:$0xff] }
  0x42   :  { %439 = vmatpush3.msra.mxu1 %v178_v12  ;;  %464 = vmatpush3.msra.mxu0 %v276_v23 }
  0x43   :  { %440 = vmatprep.subr.mxu1 %v619_v0  ;;  %465 = vmatprep.subr.mxu0 %v619_v0 }
  0x44   :  { %441 = vmatpush3.msra.mxu1 %v177_v13  ;;  %466 = vmatpush3.msra.mxu0 %v275_v24 }
  0x45   :  { %442 = vmatprep.subr.mxu1 %v619_v0  ;;  %467 = vmatprep.subr.mxu0 %v619_v0 }
  0x46   :  { %443 = vmatpush3.msra.mxu1 %v176_v14  ;;  %468 = vmatpush3.msra.mxu0 %v274_v25 }
  0x47   :  { %444 = vmatprep.subr.mxu1 %v619_v0  ;;  %469 = vmatprep.subr.mxu0 %v619_v0 }
  0x48   :  { %445 = vmatpush3.msra.mxu1 %v175_v15  ;;  %470 = vmatpush3.msra.mxu0 %v273_v26 }
  0x49   :  { %446 = vmatprep.subr.mxu1 %v619_v0  ;;  %471 = vmatprep.subr.mxu0 %v619_v0 }
  0x4a   :  { %447 = vmatpush3.msra.mxu1 %v174_v16  ;;  %472 = vmatpush3.msra.mxu0 %v272_v27 }
  0x4b   :  { %448 = vmatprep.subr.mxu1 %v619_v0  ;;  %473 = vmatprep.subr.mxu0 %v619_v0 }
  0x4c   :  { %449 = vmatpush3.msra.mxu1 %v173_v17  ;;  %474 = vmatpush3.msra.mxu0 %v271_v28 }
  0x4d   :  { %450 = vmatprep.subr.mxu1 %v619_v0  ;;  %475 = vmatprep.subr.mxu0 %v619_v0 }
  0x4e   :  { %451 = vmatpush3.msra.mxu1 %v172_v18  ;;  %476 = vmatpush3.msra.mxu0 %v270_v29 }
  0x4f   :  { %452 = vmatprep.subr.mxu1 %v619_v0  ;;  %477 = vmatprep.subr.mxu0 %v619_v0 }
  0x50   :  { %453 = vmatpush3.msra.mxu1 %v171_v19  ;;  %478 = vmatpush3.msra.mxu0 %v269_v30 }
  0x51   :  { %454 = vmatprep.subr.mxu1 %v619_v0  ;;  %479 = vmatprep.subr.mxu0 %v619_v0 }
  0x52   :  { %455 = vmatpush3.msra.mxu1 %v170_v20  ;;  %480 = vmatpush3.msra.mxu0 %v268_v31 }
  0x53   :  { %456 = vmatprep.subr.mxu1 %v619_v0  ;;  %481 = vmatprep.subr.mxu0 %v619_v0 }
  0x54   :  { %457 = vmatpush3.msra.mxu1 %v169_v21  ;;  %482 = vmatpush3.msra.mxu0 %v267_v32 }
  0x55   :  { %483 = vmatprep.subr.mxu0 %v619_v0 }
  0x56   :  { %484 = vmatpush3.msra.mxu0 %v266_v33 }
  0x57   :  { %485 = vmatprep.subr.mxu0 %v619_v0 }
  0x58   :  { %486 = vmatpush3.msra.mxu0 %v265_v34 }
  0x59   :  { %487 = vmatprep.subr.mxu0 %v619_v0 }
  0x5a   :  { %488 = vmatpush3.msra.mxu0 %v264_v40 }
  0x5b   :  { %489 = vmatprep.subr.mxu0 %v619_v0 }
  0x5c   :  { %490 = vmatpush3.msra.mxu0 %v263_v41 }
  0x5d   :  { %491 = vmatprep.subr.mxu0 %v619_v0 }
  0x5e   :  { %492 = vmatpush3.msra.mxu0 %v262_v42 }
  0xfd   :  { %v164_v36 = vpop.f32.mrf.mxu0 }
  0xfe   :  { %v165_v37 = vadd.f32 %v372_v35, %v164_v36 }
  0xff   :  { %v425_v38 = vpop.f32.mrf.mxu0 }
 0x100   :  { %v168_v39 = vmax.f32 %v165_v37, 0.0 }
 0x102   :  { %459 = vmatmul.mubr.f32.vlgmr.msra.gmra.mxu1 %v168_v39 }
 0x1c2   :  { %v257_v44 = vpop.f32.mrf.mxu1 }
 0x1c3   :  { %v258_v45 = vadd.f32 %v374_v43, %v257_v44 }
 0x1c4   :  { %v460_v46 = vpop.f32.mrf.mxu1 }
 0x1c5   :  { %v261_v47 = vmax.f32 %v258_v45, 0.0 }
 0x1c7   :  { %494 = vmatmul.mubr.f32.vlgmr.msra.gmra.mxu0 %v261_v47 }
 0x287   :  { %v350_v49 = vpop.f32.mrf.mxu0 }
 0x288   :  { %v351_v50 = vadd.f32 %v375_v48, %v350_v49 }
 0x289   :  { %v495_v51 = vpop.f32.mrf.mxu0 }
 0x28a   :  { %354 = vst [vmem:[#allocation10] sm:$0xff] %v351_v50 }
 0x28b   :  { %596 = shalt.err (!%p593_p10)
}
 0x28c   :  { %364 = dma.vmem_to_hbm [thread:$0]  %s362_s25, 128, %s744_s7, [#allocation4]  }
 0x28d   :  { %611 = dma.done.wait [#allocation4], 128  }
 0x28e   :  { %612 = vsyncadd [#allocation4], 4294967168 }
 0x28f   :  { %368 = vsyncpa [#allocation3], 1 }
 0x290   :  { %369 = vsyncpa [#allocation6], 1 }
 0x291   :  { %370 = vsyncpa [#allocation9], 1 }
 0x292   :  { %371 = vsyncpa [#allocation4], 1 }

// kernel: tpu_custom_call.1
= control target key start
LH: loop header
LB: loop body
LE: loop exit
PB: predicated region body
PF: predicated region fallthrough
CT: control target
= control target key end

     0   :  { %12 = vsyncpa [#allocation3], 0  ;;  %s737_s0 = inlined_call_operand.hbm [shape: f32[8,32], index: 0, kind: input, shape index: {}]   ;;  %s738_s1 = inlined_call_operand.hbm [shape: f32[32,128], index: 1, kind: input, shape index: {}]   ;;  %s739_s2 = inlined_call_operand.vmem [shape: f32[1,128], index: 2, kind: input, shape index: {}]   ;;  %s740_s3 = inlined_call_operand.hbm [shape: f32[128,128], index: 3, kind: input, shape index: {}]   ;;  %s741_s4 = inlined_call_operand.vmem [shape: f32[1,128], index: 4, kind: input, shape index: {}]   ;;  %s742_s5 = inlined_call_operand.hbm [shape: f32[128,128], index: 5, kind: input, shape index: {}]   ;;  %s743_s6 = inlined_call_operand.vmem [shape: f32[1,128], index: 6, kind: input, shape index: {}]   ;;  %s744_s7 = inlined_call_operand.hbm [shape: f32[8,128], index: 7, kind: output, shape index: {}]  }
   0x1   :  { %13 = vsyncpa [#allocation6], 0 }
   0x2   :  { %14 = vsyncpa [#allocation9], 0 }
   0x3   :  { %15 = vsyncpa [#allocation4], 0  ;;  %s613_s24 = smov [#allocation5]  }
   0x4   :  { %s31_s25 = sshll.u32 %s613_s24, 4  ;;  %s32_s25 = int_to_ptr.vmem [resolvable:$true] %s31_s25 }
   0x5   :  { %s513_s26 = scalar_lea.vmem %s32_s25, 512  ;;  %p518_p1 = scmp.lt.s32.totalorder %s32_s25, %s32_s25 }
   0x6   :  { %p514_p0 = scmp.ne.s32.totalorder %s32_s25, %s513_s26  ;;  %p519_p2 = scmp.lt.s32.totalorder %s513_s26, %s513_s26 }
   0x8   :  { %p520_p3 = por %p519_p2, %p518_p1 }
   0xa   :  { %p521_p4 = pnand %p520_p3, %p514_p0 }
   0xc   :  { %524 = shalt.err (!%p521_p4)
}
   0xd   :  { %s614_s27 = smov 128   ;;  %s615_s28 = smov 8  }
   0xe   :  { %37 = dma.hbm_to_vmem [thread:$0]  %s738_s1, 512, %s32_s25, [#allocation6], %s614_s27, %s614_s27, %s615_s28  }
   0xf   :  { %s616_s8 = smov [#allocation2]   ;;  %s617_s10 = smov [#allocation7]  }
  0x10   :  { %s22_s9 = sshll.u32 %s616_s8, 4  ;;  %s45_s11 = sshll.u32 %s617_s10, 4  ;;  %s23_s9 = int_to_ptr.vmem [resolvable:$true] %s22_s9  ;;  %s46_s11 = int_to_ptr.vmem [resolvable:$true] %s45_s11 }
  0x11   :  { %s533_s12 = scalar_lea.vmem %s23_s9, 128  ;;  %p538_p6 = scmp.lt.s32.totalorder %s23_s9, %s23_s9 }
  0x12   :  { %p534_p5 = scmp.ne.s32.totalorder %s23_s9, %s533_s12  ;;  %p539_p7 = scmp.lt.s32.totalorder %s533_s12, %s533_s12 }
  0x14   :  { %p540_p8 = por %p539_p7, %p538_p6 }
  0x16   :  { %p541_p9 = pnand %p540_p8, %p534_p5 }
  0x18   :  { %544 = shalt.err (!%p541_p9)
}
  0x19   :  { %25 = dma.hbm_to_vmem [thread:$0]  %s737_s0, 128, %s23_s9, [#allocation3]  }
  0x1a   :  { %s553_s15 = scalar_lea.vmem %s46_s11, 2048  ;;  %p558_p11 = scmp.lt.s32.totalorder %s46_s11, %s46_s11 }
  0x1b   :  { %p554_p10 = scmp.ne.s32.totalorder %s46_s11, %s553_s15  ;;  %p559_p12 = scmp.lt.s32.totalorder %s553_s15, %s553_s15 }
  0x1d   :  { %p560_p13 = por %p559_p12, %p558_p11 }
  0x1f   :  { %p561_p0 = pnand %p560_p13, %p554_p10 }
  0x21   :  { %564 = shalt.err (!%p561_p0)
}
  0x22   :  { %51 = dma.hbm_to_vmem [thread:$0]  %s740_s3, 2048, %s46_s11, [#allocation6], %s614_s27, %s614_s27, %s615_s28  }
  0x23   :  { %s618_s17 = smov [#allocation8]  }
  0x24   :  { %s59_s18 = sshll.u32 %s618_s17, 4  ;;  %s60_s18 = int_to_ptr.vmem [resolvable:$true] %s59_s18 }
  0x25   :  { %s573_s19 = scalar_lea.vmem %s60_s18, 2048  ;;  %p578_p2 = scmp.lt.s32.totalorder %s60_s18, %s60_s18 }
  0x26   :  { %p574_p1 = scmp.ne.s32.totalorder %s60_s18, %s573_s19  ;;  %p579_p3 = scmp.lt.s32.totalorder %s573_s19, %s573_s19 }
  0x28   :  { %p580_p4 = por %p579_p3, %p578_p2 }
  0x2a   :  { %p581_p5 = pnand %p580_p4, %p574_p1 }
  0x2c   :  { %584 = shalt.err (!%p581_p5)
}
  0x2d   :  { %65 = dma.hbm_to_vmem [thread:$0]  %s742_s5, 2048, %s60_s18, [#allocation9], %s614_s27, %s614_s27, %s615_s28  }
  0x2e   :  { %605 = dma.done.wait [#allocation3], 128  }
  0x2f   :  { %606 = vsyncadd [#allocation3], 4294967168 }
  0x30   :  { %607 = dma.done.wait [#allocation6], 2560  }
  0x31   :  { %608 = vsyncadd [#allocation6], 4294964736 }
  0x32   :  { %609 = dma.done.wait [#allocation9], 2048  }
  0x33   :  { %610 = vsyncadd [#allocation9], 4294965248  ;;  %v619_v0 = vmov 0.0   ;;  %vm620_vm0 = vmmov 0   ;;  %v87_v1 = vld [vmem:[#allocation5 + $0x18] sm:$0xff]  ;;  %v86_v2 = vld [vmem:[#allocation5 + $0x10] sm:$0xff] }
  0x34   :  { %415 = vmatprep.subr.mxu0 %v619_v0  ;;  %423 = vmatprep.mubr.msk.f32.mxu0 %vm620_vm0, %v619_v0  ;;  %v184_v3 = vld [vmem:[#allocation7 + $0x78] sm:$0xff]  ;;  %v85_v4 = vld [vmem:[#allocation5 + $0x8] sm:$0xff]  ;;  %v183_v5 = vld [vmem:[#allocation7 + $0x70] sm:$0xff]  ;;  %vm94_vm1 = vcmask 261120   ;;  %s621_s24 = smov [#allocation10]  }
  0x35   :  { %426 = vmatprep.subr.mxu1 %v619_v0  ;;  %458 = vmatprep.mubr.msk.f32.mxu1 %vm620_vm0, %v619_v0  ;;  %v182_v6 = vld [vmem:[#allocation7 + $0x68] sm:$0xff]  ;;  %v84_v7 = vld [vmem:[#allocation5] sm:$0xff]  ;;  %v83_v8 = vld [vmem:[#allocation2] sm:$0xff]  ;;  %s361_s25 = sshll.u32 %s621_s24, 4  ;;  %s362_s25 = int_to_ptr.vmem [resolvable:$true] %s361_s25 }
  0x36   :  { %416 = vmatpush3.msra.mxu0 %v87_v1  ;;  %427 = vmatpush3.msra.mxu1 %v184_v3  ;;  %v181_v9 = vld [vmem:[#allocation7 + $0x60] sm:$0xff]  ;;  %v180_v10 = vld [vmem:[#allocation7 + $0x58] sm:$0xff]  ;;  %v179_v11 = vld [vmem:[#allocation7 + $0x50] sm:$0xff]  ;;  %s585_s26 = scalar_lea.vmem %s362_s25, 128  ;;  %p590_p7 = scmp.lt.s32.totalorder %s362_s25, %s362_s25 }
  0x37   :  { %417 = vmatprep.subr.mxu0 %v619_v0  ;;  %428 = vmatprep.subr.mxu1 %v619_v0  ;;  %v178_v12 = vld [vmem:[#allocation7 + $0x48] sm:$0xff]  ;;  %v177_v13 = vld [vmem:[#allocation7 + $0x40] sm:$0xff]  ;;  %v176_v14 = vld [vmem:[#allocation7 + $0x38] sm:$0xff]  ;;  %p586_p6 = scmp.ne.s32.totalorder %s362_s25, %s585_s26  ;;  %p591_p8 = scmp.lt.s32.totalorder %s585_s26, %s585_s26 }
  0x38   :  { %418 = vmatpush3.msra.mxu0 %v86_v2  ;;  %429 = vmatpush3.msra.mxu1 %v183_v5  ;;  %v175_v15 = vld [vmem:[#allocation7 + $0x30] sm:$0xff]  ;;  %v174_v16 = vld [vmem:[#allocation7 + $0x28] sm:$0xff]  ;;  %v173_v17 = vld [vmem:[#allocation7 + $0x20] sm:$0xff] }
  0x39   :  { %419 = vmatprep.subr.mxu0 %v619_v0  ;;  %430 = vmatprep.subr.mxu1 %v619_v0  ;;  %v172_v18 = vld [vmem:[#allocation7 + $0x18] sm:$0xff]  ;;  %v171_v19 = vld [vmem:[#allocation7 + $0x10] sm:$0xff]  ;;  %v170_v20 = vld [vmem:[#allocation7 + $0x8] sm:$0xff]  ;;  %p592_p9 = por %p591_p8, %p590_p7 }
  0x3a   :  { %420 = vmatpush3.msra.mxu0 %v85_v4  ;;  %431 = vmatpush3.msra.mxu1 %v182_v6  ;;  %v169_v21 = vld [vmem:[#allocation7] sm:$0xff]  ;;  %v277_v22 = vld [vmem:[#allocation8 + $0x78] sm:$0xff]  ;;  %v276_v23 = vld [vmem:[#allocation8 + $0x70] sm:$0xff] }
  0x3b   :  { %421 = vmatprep.subr.mxu0 %v619_v0  ;;  %432 = vmatprep.subr.mxu1 %v619_v0  ;;  %v275_v24 = vld [vmem:[#allocation8 + $0x68] sm:$0xff]  ;;  %v274_v25 = vld [vmem:[#allocation8 + $0x60] sm:$0xff]  ;;  %v273_v26 = vld [vmem:[#allocation8 + $0x58] sm:$0xff]  ;;  %p593_p10 = pnand %p592_p9, %p586_p6 }
  0x3c   :  { %422 = vmatpush3.msra.mxu0 %v84_v7  ;;  %433 = vmatpush3.msra.mxu1 %v181_v9  ;;  %v272_v27 = vld [vmem:[#allocation8 + $0x50] sm:$0xff]  ;;  %v271_v28 = vld [vmem:[#allocation8 + $0x48] sm:$0xff]  ;;  %v270_v29 = vld [vmem:[#allocation8 + $0x40] sm:$0xff] }
  0x3d   :  { %424 = vmatmul.mubr.msk.f32.vlgmr.msra.gmra.mxu0 %vm94_vm1, %v83_v8  ;;  %434 = vmatprep.subr.mxu1 %v619_v0  ;;  %v269_v30 = vld [vmem:[#allocation8 + $0x38] sm:$0xff]  ;;  %v268_v31 = vld [vmem:[#allocation8 + $0x30] sm:$0xff]  ;;  %v267_v32 = vld [vmem:[#allocation8 + $0x28] sm:$0xff] }
  0x3e   :  { %461 = vmatprep.subr.mxu0 %v619_v0  ;;  %435 = vmatpush3.msra.mxu1 %v180_v10  ;;  %v266_v33 = vld [vmem:[#allocation8 + $0x20] sm:$0xff]  ;;  %v265_v34 = vld [vmem:[#allocation8 + $0x18] sm:$0xff]  ;;  %v264_v40 = vld [vmem:[#allocation8 + $0x10] sm:$0xff] }
  0x3f   :  { %493 = vmatprep.mubr.msk.f32.mxu0 %vm620_vm0, %v619_v0  ;;  %436 = vmatprep.subr.mxu1 %v619_v0  ;;  %v372_v35 = vld [vmem:[%s739_s2] ss:$0 sm:$0xff]  ;;  %v263_v41 = vld [vmem:[#allocation8 + $0x8] sm:$0xff]  ;;  %v262_v42 = vld [vmem:[#allocation8] sm:$0xff] }
  0x40   :  { %437 = vmatpush3.msra.mxu1 %v179_v11  ;;  %462 = vmatpush3.msra.mxu0 %v277_v22  ;;  %v374_v43 = vld [vmem:[%s741_s4] ss:$0 sm:$0xff] }
  0x41   :  { %438 = vmatprep.subr.mxu1 %v619_v0  ;;  %463 = vmatprep.subr.mxu0 %v619_v0  ;;  %v375_v48 = vld [vmem:[%s743_s6] ss:$0 sm:$0xff] }
  0x42   :  { %439 = vmatpush3.msra.mxu1 %v178_v12  ;;  %464 = vmatpush3.msra.mxu0 %v276_v23 }
  0x43   :  { %440 = vmatprep.subr.mxu1 %v619_v0  ;;  %465 = vmatprep.subr.mxu0 %v619_v0 }
  0x44   :  { %441 = vmatpush3.msra.mxu1 %v177_v13  ;;  %466 = vmatpush3.msra.mxu0 %v275_v24 }
  0x45   :  { %442 = vmatprep.subr.mxu1 %v619_v0  ;;  %467 = vmatprep.subr.mxu0 %v619_v0 }
  0x46   :  { %443 = vmatpush3.msra.mxu1 %v176_v14  ;;  %468 = vmatpush3.msra.mxu0 %v274_v25 }
  0x47   :  { %444 = vmatprep.subr.mxu1 %v619_v0  ;;  %469 = vmatprep.subr.mxu0 %v619_v0 }
  0x48   :  { %445 = vmatpush3.msra.mxu1 %v175_v15  ;;  %470 = vmatpush3.msra.mxu0 %v273_v26 }
  0x49   :  { %446 = vmatprep.subr.mxu1 %v619_v0  ;;  %471 = vmatprep.subr.mxu0 %v619_v0 }
  0x4a   :  { %447 = vmatpush3.msra.mxu1 %v174_v16  ;;  %472 = vmatpush3.msra.mxu0 %v272_v27 }
  0x4b   :  { %448 = vmatprep.subr.mxu1 %v619_v0  ;;  %473 = vmatprep.subr.mxu0 %v619_v0 }
  0x4c   :  { %449 = vmatpush3.msra.mxu1 %v173_v17  ;;  %474 = vmatpush3.msra.mxu0 %v271_v28 }
  0x4d   :  { %450 = vmatprep.subr.mxu1 %v619_v0  ;;  %475 = vmatprep.subr.mxu0 %v619_v0 }
  0x4e   :  { %451 = vmatpush3.msra.mxu1 %v172_v18  ;;  %476 = vmatpush3.msra.mxu0 %v270_v29 }
  0x4f   :  { %452 = vmatprep.subr.mxu1 %v619_v0  ;;  %477 = vmatprep.subr.mxu0 %v619_v0 }
  0x50   :  { %453 = vmatpush3.msra.mxu1 %v171_v19  ;;  %478 = vmatpush3.msra.mxu0 %v269_v30 }
  0x51   :  { %454 = vmatprep.subr.mxu1 %v619_v0  ;;  %479 = vmatprep.subr.mxu0 %v619_v0 }
  0x52   :  { %455 = vmatpush3.msra.mxu1 %v170_v20  ;;  %480 = vmatpush3.msra.mxu0 %v268_v31 }
  0x53   :  { %456 = vmatprep.subr.mxu1 %v619_v0  ;;  %481 = vmatprep.subr.mxu0 %v619_v0 }
  0x54   :  { %457 = vmatpush3.msra.mxu1 %v169_v21  ;;  %482 = vmatpush3.msra.mxu0 %v267_v32 }
  0x55   :  { %483 = vmatprep.subr.mxu0 %v619_v0 }
  0x56   :  { %484 = vmatpush3.msra.mxu0 %v266_v33 }
  0x57   :  { %485 = vmatprep.subr.mxu0 %v619_v0 }
  0x58   :  { %486 = vmatpush3.msra.mxu0 %v265_v34 }
  0x59   :  { %487 = vmatprep.subr.mxu0 %v619_v0 }
  0x5a   :  { %488 = vmatpush3.msra.mxu0 %v264_v40 }
  0x5b   :  { %489 = vmatprep.subr.mxu0 %v619_v0 }
  0x5c   :  { %490 = vmatpush3.msra.mxu0 %v263_v41 }
  0x5d   :  { %491 = vmatprep.subr.mxu0 %v619_v0 }
  0x5e   :  { %492 = vmatpush3.msra.mxu0 %v262_v42 }
  0xfd   :  { %v164_v36 = vpop.f32.mrf.mxu0 }
  0xfe   :  { %v165_v37 = vadd.f32 %v372_v35, %v164_v36 }
  0xff   :  { %v425_v38 = vpop.f32.mrf.mxu0 }
 0x100   :  { %v168_v39 = vmax.f32 %v165_v37, 0.0 }
 0x102   :  { %459 = vmatmul.mubr.f32.vlgmr.msra.gmra.mxu1 %v168_v39 }
 0x1c2   :  { %v257_v44 = vpop.f32.mrf.mxu1 }
 0x1c3   :  { %v258_v45 = vadd.f32 %v374_v43, %v257_v44 }
 0x1c4   :  { %v460_v46 = vpop.f32.mrf.mxu1 }
 0x1c5   :  { %v261_v47 = vmax.f32 %v258_v45, 0.0 }
 0x1c7   :  { %494 = vmatmul.mubr.f32.vlgmr.msra.gmra.mxu0 %v261_v47 }
 0x287   :  { %v350_v49 = vpop.f32.mrf.mxu0 }
 0x288   :  { %v351_v50 = vadd.f32 %v375_v48, %v350_v49 }
 0x289   :  { %v495_v51 = vpop.f32.mrf.mxu0 }
 0x28a   :  { %354 = vst [vmem:[#allocation10] sm:$0xff] %v351_v50 }
 0x28b   :  { %596 = shalt.err (!%p593_p10)
}
 0x28c   :  { %364 = dma.vmem_to_hbm [thread:$0]  %s362_s25, 128, %s744_s7, [#allocation4]  }
 0x28d   :  { %611 = dma.done.wait [#allocation4], 128  }
 0x28e   :  { %612 = vsyncadd [#allocation4], 4294967168 }
 0x28f   :  { %368 = vsyncpa [#allocation3], 1 }
 0x290   :  { %369 = vsyncpa [#allocation6], 1 }
 0x291   :  { %370 = vsyncpa [#allocation9], 1 }
 0x292   :  { %371 = vsyncpa [#allocation4], 1 }

</bundles_post_ra>
